<compile_context>
chip_gen: v7x
topology: tpu7x:2x2x1
jax: 0.10.0
libtpu: 0.0.40
codegen_flags: <defaults>
</compile_context>

<pallas_src>
import jax
import jax.numpy as jnp
import numpy as np
from jax.experimental import pallas as pl
from jax.experimental.pallas import tpu as pltpu


def _mlp_kernel(x_ref, w1_ref, b1_ref, w2_ref, b2_ref, w3_ref, b3_ref, o_ref):
    """Fused 3-layer MLP; batch lives on the 128-lane axis.

    x_ref : [TM, P]  input tile (batch-major, exactly as the caller stores x)
    w*_ref: PyTorch-layout [out, in] weights (f32, VMEM-resident across tiles)
    b*_ref: [out, 1] biases (f32)
    o_ref : [Q, TM]  lane-dense output tile (f32)
    """
    # Layer 1: contract both operands over the feature axis P (= their minor
    # axes): [H, P] x [TM, P] -> [H, TM].  The implied [TM,P]->[P,TM] flip of
    # the 4-wide operand is a tiny XLU/transposed-RHS matmul step and puts the
    # batch on the 128-lane axis for everything downstream.
    h = jnp.einsum("hp,bp->hb", w1_ref[...], x_ref[...],
                   preferred_element_type=jnp.float32)
    h = jnp.maximum(h + b1_ref[...], 0.0)
    # (Dropout -> identity in eval mode)

    # Layer 2: [H, H] @ [H, TM] -> [H, TM], f32 accumulation on the MXU.
    h = jnp.dot(w2_ref[...], h, preferred_element_type=jnp.float32)
    h = jnp.maximum(h + b2_ref[...], 0.0)
    # (Dropout -> identity in eval mode)

    # Layer 3: [Q, H] @ [H, TM] -> [Q, TM]; store stays lane-dense.
    out = jnp.dot(w3_ref[...], h, preferred_element_type=jnp.float32) + b3_ref[...]
    o_ref[...] = out.astype(o_ref.dtype)


def all_q_model_forward(x, params, *, block_b=8192, transposed_output=False):
    """Run the fused MLP forward pass.

    x      : [B, P] float input (batch-major, used as-is: no host transpose/pad)
    params : dict with PyTorch-layout weights
             w1 [H, P], b1 [H, 1], w2 [H, H], b2 [H, 1], w3 [Q, H], b3 [Q, 1]
    returns: [B, Q] float32 (or [Q, B] if transposed_output=True).
    """
    B, P = x.shape
    H = params["w1"].shape[0]
    Q = params["w3"].shape[0]

    if B <= block_b:
        TM = B                          # single full-extent tile (always legal)
    else:
        assert block_b % 128 == 0, "block_b must be a multiple of 128"
        TM = block_b
    grid = (pl.cdiv(B, TM),)            # ragged last tile handled by Pallas

    x = x.astype(jnp.float32)
    w1 = params["w1"].astype(jnp.float32)
    w2 = params["w2"].astype(jnp.float32)
    w3 = params["w3"].astype(jnp.float32)
    b1 = params["b1"].astype(jnp.float32)
    b2 = params["b2"].astype(jnp.float32)
    b3 = params["b3"].astype(jnp.float32)

    # Weights / biases: full-array blocks with a constant index_map -> DMA'd
    # into VMEM once and kept resident across all batch tiles.
    def const(shape):
        return pl.BlockSpec(shape, lambda i, _s=shape: (0,) * len(_s))

    weight_bytes = 4 * (w1.size + b1.size + w2.size + b2.size + w3.size + b3.size)
    cost = pl.CostEstimate(
        flops=int(2 * B * (P * H + H * H + H * Q)),
        bytes_accessed=int(4 * B * (P + Q) + weight_bytes),
        transcendentals=0,
    )

    outT = pl.pallas_call(
        _mlp_kernel,
        out_shape=jax.ShapeDtypeStruct((Q, B), jnp.float32),
        grid=grid,
        in_specs=[
            pl.BlockSpec((TM, P), lambda i: (i, 0)),   # x tile, streamed
            const((H, P)), const((H, 1)),
            const((H, H)), const((H, 1)),
            const((Q, H)), const((Q, 1)),
        ],
        out_specs=pl.BlockSpec((Q, TM), lambda i: (0, i)),
        compiler_params=pltpu.CompilerParams(
            dimension_semantics=("parallel",),
            vmem_limit_bytes=32 * 1024 * 1024),
        cost_estimate=cost,
    )(x, w1, b1, w2, b2, w3, b3)

    if transposed_output:
        return outT                      # [Q, B], lane-dense, no extra HBM pass
    return outT.T                        # [B, Q], matches the PyTorch module


def init_params(key, in_shape, hidden_size, num_quantiles):
    """Orthogonal weights (PyTorch [out, in] layout), zero biases."""
    k1, k2, k3 = jax.random.split(key, 3)
    orth = jax.nn.initializers.orthogonal()
    return {
        "w1": orth(k1, (hidden_size, in_shape), jnp.float32),
        "b1": jnp.zeros((hidden_size, 1), jnp.float32),
        "w2": orth(k2, (hidden_size, hidden_size), jnp.float32),
        "b2": jnp.zeros((hidden_size, 1), jnp.float32),
        "w3": orth(k3, (num_quantiles, hidden_size), jnp.float32),
        "b3": jnp.zeros((num_quantiles, 1), jnp.float32),
    }


def _reference(x, params):
    h = jnp.maximum(x @ params["w1"].T + params["b1"].T, 0.0)
    h = jnp.maximum(h @ params["w2"].T + params["b2"].T, 0.0)
    return h @ params["w3"].T + params["b3"].T


if __name__ == "__main__":
    # Shapes consistent with the module: p=4 features, hidden=32,
    # quantiles = [0.05, 0.25, 0.5, 0.75, 0.95] -> 5 outputs.
    quantiles = np.array([0.05, 0.25, 0.5, 0.75, 0.95])
    in_shape, hidden_size, num_q = 4, 32, len(quantiles)

    key = jax.random.PRNGKey(0)
    kx, kp, kx2, kx3 = jax.random.split(key, 4)
    params = init_params(kp, in_shape, hidden_size, num_q)

    # 1) small batch (B=8): single full-extent tile, tight f32 check.
    x = jax.random.normal(kx, (8, in_shape), jnp.float32)
    out = jax.block_until_ready(all_q_model_forward(x, params))
    ref = _reference(x, params)
    np.testing.assert_allclose(np.asarray(out), np.asarray(ref),
                               rtol=1e-5, atol=1e-5)
    assert out.shape == (8, num_q)

    # 2) batch grid with a ragged last tile (B=300, TM=128 -> grid=(3,)).
    x_mid = jax.random.normal(kx2, (300, in_shape), jnp.float32)
    out_mid = jax.block_until_ready(
        all_q_model_forward(x_mid, params, block_b=128))
    ref_mid = _reference(x_mid, params)
    np.testing.assert_allclose(np.asarray(out_mid), np.asarray(ref_mid),
                               rtol=1e-5, atol=1e-5)
    assert out_mid.shape == (300, num_q)

    # 3) default large tile (TM=8192, grid=(3,), ragged last tile) and the
    #    lane-dense [Q, B] output option (skips the final wrapper transpose).
    x_big = jax.random.normal(kx3, (20000, in_shape), jnp.float32)
    out_big = jax.block_until_ready(all_q_model_forward(x_big, params))
    ref_big = _reference(x_big, params)
    np.testing.assert_allclose(np.asarray(out_big), np.asarray(ref_big),
                               rtol=1e-5, atol=1e-5)
    out_qb = jax.block_until_ready(
        all_q_model_forward(x_big, params, transposed_output=True))
    np.testing.assert_allclose(np.asarray(out_qb.T), np.asarray(ref_big),
                               rtol=1e-5, atol=1e-5)
    assert out_big.shape == (20000, num_q) and out_qb.shape == (num_q, 20000)

    print("KERNEL_OK")
</pallas_src>

<mosaic_0001>
module attributes {stable_mosaic.version = 11 : i64} {
  func.func @_mlp_kernel(%arg0: i32, %arg1: memref<8x4xf32, #tpu.memory_space<vmem>>, %arg2: memref<32x4xf32, #tpu.memory_space<vmem>>, %arg3: memref<32x1xf32, #tpu.memory_space<vmem>>, %arg4: memref<32x32xf32, #tpu.memory_space<vmem>>, %arg5: memref<32x1xf32, #tpu.memory_space<vmem>>, %arg6: memref<5x32xf32, #tpu.memory_space<vmem>>, %arg7: memref<5x1xf32, #tpu.memory_space<vmem>>, %arg8: memref<5x8xf32, #tpu.memory_space<vmem>>) attributes {dimension_semantics = [#tpu.dimension_semantics<parallel>], iteration_bounds = array<i64: 1>, scalar_prefetch = 0 : i64, scratch_operands = 0 : i64, tpu.core_type = #tpu.core_type<tc>, window_params = [{transform_indices = @transform_0, window_bounds = array<i64: 8, 4>}, {pipeline_mode = #tpu.pipeline_mode<synchronous>, transform_indices = @transform_1, window_bounds = array<i64: 32, 4>}, {pipeline_mode = #tpu.pipeline_mode<synchronous>, transform_indices = @transform_2, window_bounds = array<i64: 32, 1>}, {pipeline_mode = #tpu.pipeline_mode<synchronous>, transform_indices = @transform_3, window_bounds = array<i64: 32, 32>}, {pipeline_mode = #tpu.pipeline_mode<synchronous>, transform_indices = @transform_4, window_bounds = array<i64: 32, 1>}, {pipeline_mode = #tpu.pipeline_mode<synchronous>, transform_indices = @transform_5, window_bounds = array<i64: 5, 32>}, {pipeline_mode = #tpu.pipeline_mode<synchronous>, transform_indices = @transform_6, window_bounds = array<i64: 5, 1>}, {transform_indices = @transform_7, window_bounds = array<i64: 5, 8>}]} {
    %c0 = arith.constant 0 : index
    %c0_0 = arith.constant 0 : index
    %0 = vector.load %arg2[%c0, %c0_0] : memref<32x4xf32, #tpu.memory_space<vmem>>, vector<32x4xf32>
    %c0_1 = arith.constant 0 : index
    %c0_2 = arith.constant 0 : index
    %1 = vector.load %arg1[%c0_1, %c0_2] : memref<8x4xf32, #tpu.memory_space<vmem>>, vector<8x4xf32>
    "tpu.trace_start"() <{level = 10 : i32, message = "hp,bp->hb"}> : () -> ()
    %cst = arith.constant dense<0.000000e+00> : vector<32x8xf32>
    %2 = tpu.matmul %0, %1, %cst {dimension_numbers = #tpu.dot_dimension_numbers<[1], [1], [0], [0], [0, 0, 1, 0], [], []>} : vector<32x4xf32>, vector<8x4xf32>, vector<32x8xf32> -> vector<32x8xf32>
    "tpu.trace_stop"() : () -> ()
    %c0_3 = arith.constant 0 : index
    %c0_4 = arith.constant 0 : index
    %3 = vector.load %arg3[%c0_3, %c0_4] : memref<32x1xf32, #tpu.memory_space<vmem>>, vector<32x1xf32>
    %4 = vector.broadcast %3 : vector<32x1xf32> to vector<32x8xf32>
    %5 = arith.addf %2, %4 : vector<32x8xf32>
    %cst_5 = arith.constant 0.000000e+00 : f32
    %6 = vector.broadcast %cst_5 : f32 to vector<32x8xf32>
    %7 = arith.maximumf %5, %6 : vector<32x8xf32>
    %c0_6 = arith.constant 0 : index
    %c0_7 = arith.constant 0 : index
    %8 = vector.load %arg4[%c0_6, %c0_7] : memref<32x32xf32, #tpu.memory_space<vmem>>, vector<32x32xf32>
    %cst_8 = arith.constant dense<0.000000e+00> : vector<32x8xf32>
    %9 = tpu.matmul %8, %7, %cst_8 {dimension_numbers = #tpu.dot_dimension_numbers<[1], [0], [0], [1], [0, 0, 1, 1], [], []>} : vector<32x32xf32>, vector<32x8xf32>, vector<32x8xf32> -> vector<32x8xf32>
    %c0_9 = arith.constant 0 : index
    %c0_10 = arith.constant 0 : index
    %10 = vector.load %arg5[%c0_9, %c0_10] : memref<32x1xf32, #tpu.memory_space<vmem>>, vector<32x1xf32>
    %11 = vector.broadcast %10 : vector<32x1xf32> to vector<32x8xf32>
    %12 = arith.addf %9, %11 : vector<32x8xf32>
    %cst_11 = arith.constant 0.000000e+00 : f32
    %13 = vector.broadcast %cst_11 : f32 to vector<32x8xf32>
    %14 = arith.maximumf %12, %13 : vector<32x8xf32>
    %c0_12 = arith.constant 0 : index
    %c0_13 = arith.constant 0 : index
    %15 = vector.load %arg6[%c0_12, %c0_13] : memref<5x32xf32, #tpu.memory_space<vmem>>, vector<5x32xf32>
    %cst_14 = arith.constant dense<0.000000e+00> : vector<5x8xf32>
    %16 = tpu.matmul %15, %14, %cst_14 {dimension_numbers = #tpu.dot_dimension_numbers<[1], [0], [0], [1], [0, 0, 1, 1], [], []>} : vector<5x32xf32>, vector<32x8xf32>, vector<5x8xf32> -> vector<5x8xf32>
    %c0_15 = arith.constant 0 : index
    %c0_16 = arith.constant 0 : index
    %17 = vector.load %arg7[%c0_15, %c0_16] : memref<5x1xf32, #tpu.memory_space<vmem>>, vector<5x1xf32>
    %18 = vector.broadcast %17 : vector<5x1xf32> to vector<5x8xf32>
    %19 = arith.addf %16, %18 : vector<5x8xf32>
    %c0_17 = arith.constant 0 : index
    %c0_18 = arith.constant 0 : index
    %20 = vector.load %arg8[%c0_17, %c0_18] : memref<5x8xf32, #tpu.memory_space<vmem>>, vector<5x8xf32>
    tpu.vector_store %arg8[%c0_17, %c0_18], %19 {strides = array<i32>} : memref<5x8xf32, #tpu.memory_space<vmem>>, vector<5x8xf32>,
    return
  }
  func.func @transform_0(%arg0: i32) -> (i32, i32) {
    %c0_i32 = arith.constant 0 : i32
    %c0_i32_0 = arith.constant 0 : i32
    return %arg0, %c0_i32 : i32, i32
  }
  func.func @transform_1(%arg0: i32) -> (i32, i32) {
    %c0_i32 = arith.constant 0 : i32
    %c0_i32_0 = arith.constant 0 : i32
    %c0_i32_1 = arith.constant 0 : i32
    return %c0_i32, %c0_i32_0 : i32, i32
  }
  func.func @transform_2(%arg0: i32) -> (i32, i32) {
    %c0_i32 = arith.constant 0 : i32
    %c0_i32_0 = arith.constant 0 : i32
    %c0_i32_1 = arith.constant 0 : i32
    return %c0_i32, %c0_i32_0 : i32, i32
  }
  func.func @transform_3(%arg0: i32) -> (i32, i32) {
    %c0_i32 = arith.constant 0 : i32
    %c0_i32_0 = arith.constant 0 : i32
    %c0_i32_1 = arith.constant 0 : i32
    return %c0_i32, %c0_i32_0 : i32, i32
  }
  func.func @transform_4(%arg0: i32) -> (i32, i32) {
    %c0_i32 = arith.constant 0 : i32
    %c0_i32_0 = arith.constant 0 : i32
    %c0_i32_1 = arith.constant 0 : i32
    return %c0_i32, %c0_i32_0 : i32, i32
  }
  func.func @transform_5(%arg0: i32) -> (i32, i32) {
    %c0_i32 = arith.constant 0 : i32
    %c0_i32_0 = arith.constant 0 : i32
    %c0_i32_1 = arith.constant 0 : i32
    return %c0_i32, %c0_i32_0 : i32, i32
  }
  func.func @transform_6(%arg0: i32) -> (i32, i32) {
    %c0_i32 = arith.constant 0 : i32
    %c0_i32_0 = arith.constant 0 : i32
    %c0_i32_1 = arith.constant 0 : i32
    return %c0_i32, %c0_i32_0 : i32, i32
  }
  func.func @transform_7(%arg0: i32) -> (i32, i32) {
    %c0_i32 = arith.constant 0 : i32
    %c0_i32_0 = arith.constant 0 : i32
    return %c0_i32, %arg0 : i32, i32
  }
}

</mosaic_0001>

<bundles_post_ra>
// kernel: tpu_custom_call.1
= control target key start
LH: loop header
LB: loop body
LE: loop exit
PB: predicated region body
PF: predicated region fallthrough
CT: control target
= control target key end

     0   :  { %vm56_vm0 = vcmask 31744   ;;  %v493_v4 = vmov 0   ;;  %s618_s0 = inlined_call_operand.vmem [shape: f32[8,4], index: 0, kind: input, shape index: {}]   ;;  %s619_s1 = inlined_call_operand.vmem [shape: f32[32,4], index: 1, kind: input, shape index: {}]   ;;  %s620_s2 = inlined_call_operand.vmem [shape: f32[32,1], index: 2, kind: input, shape index: {}]   ;;  %s621_s3 = inlined_call_operand.vmem [shape: f32[32,32], index: 3, kind: input, shape index: {}]   ;;  %s622_s4 = inlined_call_operand.vmem [shape: f32[32,1], index: 4, kind: input, shape index: {}]   ;;  %s623_s5 = inlined_call_operand.vmem [shape: f32[5,32], index: 5, kind: input, shape index: {}]   ;;  %s624_s6 = inlined_call_operand.vmem [shape: f32[5,1], index: 6, kind: input, shape index: {}]   ;;  %s625_s7 = inlined_call_operand.hbm [shape: f32[5,8], index: 7, kind: output, shape index: {}]  }
   0x1   :  { %v31_v0 = vld [vmem:[%s618_s0] sm:$0xff]  ;;  %v28_v3 = vld [vmem:[%s619_s1 + $0x8] sm:$0xff]  ;;  %467 = vset.pattern.permute.xlu0 %v493_v4  ;;  %v34_v5 = vld [vmem:[%s620_s2 + $0x10] sm:$0xff]  ;;  %468 = vset.pattern.permute.xlu1 %v493_v4 }
   0x2   :  { %v27_v1 = vld [vmem:[%s619_s1] sm:$0xff]  ;;  %415 = vmatprep.subr.msk.mxu0 %vm56_vm0, %v31_v0  ;;  %v29_v6 = vld [vmem:[%s619_s1 + $0x10] sm:$0xff]  ;;  %v33_v7 = vld [vmem:[%s620_s2 + $0x8] sm:$0xff]  ;;  %48 = vperm.xlu1 %468, %v34_v5  }
   0x3   :  { %417 = vmatprep.mubr.msk.f32.mxu0 %vm56_vm0, %v27_v1  ;;  %v32_v2 = vld [vmem:[%s620_s2] sm:$0xff]  ;;  %416 = vmatpush3.xpose.msk.msra.mxu0 %vm56_vm0, %v31_v0 }
   0x4   :  { %38 = vperm.xlu0 %467, %v32_v2  }
   0x5   :  { %12 = vsyncpa [#allocation3], 0  ;;  %v35_v8 = vld [vmem:[%s620_s2 + $0x18] sm:$0xff]  ;;  %v165_v10 = vld [vmem:[%s622_s4] sm:$0xff]  ;;  %vm189_vm1 = vcmask 261120   ;;  %v494_v37 = vmov 0.0|0.0  }
   0x6   :  { %418 = vmatmul.mubr.msk.f32.vlgmr.msra.gmra.mrb[0].mxu0 %vm56_vm0, %v28_v3  ;;  %v30_v9 = vld [vmem:[%s619_s1 + $0x18] sm:$0xff]  ;;  %53 = vperm.xlu1 %468, %v35_v8   ;;  %v166_v11 = vld [vmem:[%s622_s4 + $0x8] sm:$0xff]  ;;  %v167_v12 = vld [vmem:[%s622_s4 + $0x10] sm:$0xff]  ;;  %vm495_vm2 = vmmov 0   ;;  %v496_v38 = vmov 0.0   ;;  %s497_s9 = smov [#allocation2]  }
   0x7   :  { %420 = vmatprep.mubr.msk.f32.mxu0 %vm56_vm0, %v29_v6  ;;  %v168_v13 = vld [vmem:[%s622_s4 + $0x18] sm:$0xff]  ;;  %v292_v14 = vld [vmem:[%s624_s6] sm:$0x1f]  ;;  %v162_v34 = vld [vmem:[%s621_s3 + $0x8] sm:$0xff]  ;;  %456 = vmatprep.subr.bf16.mxu0 %v494_v37  ;;  %s379_s10 = sshll.u32 %s497_s9, 4  ;;  %vm371_vm3 = vcmask 61440   ;;  %s380_s10 = int_to_ptr.vmem [resolvable:$true] %s379_s10 }
   0x8   :  { %43 = vperm.xlu0 %467, %v33_v7   ;;  %v161_v15 = vld [vmem:[%s621_s3] sm:$0xff]  ;;  %v163_v35 = vld [vmem:[%s621_s3 + $0x10] sm:$0xff]  ;;  %v164_v36 = vld [vmem:[%s621_s3 + $0x18] sm:$0xff]  ;;  %s469_s11 = scalar_lea.vmem %s380_s10, 128  ;;  %p474_p1 = scmp.lt.s32.totalorder %s380_s10, %s380_s10 }
   0x9   :  { %431 = vmatprep.mubr.msk.f32.mxu1 %vm189_vm1, %v161_v15  ;;  %v291_v57 = vld [vmem:[%s623_s5] sm:$0x1f]  ;;  %p470_p0 = scmp.ne.s32.totalorder %s380_s10, %s469_s11  ;;  %p475_p2 = scmp.lt.s32.totalorder %s469_s11, %s469_s11 }
   0xa   :  { %421 = vmatmul.mubr.msk.f32.gmra.mrb[2].mxu0 %vm56_vm0, %v30_v9  ;;  %176 = vperm.xlu1 %468, %v166_v11  }
   0xb   :  { %445 = vmatprep.mubr.msk.f32.mxu0 %vm495_vm2, %v496_v38  ;;  %p476_p3 = por %p475_p2, %p474_p1 }
   0xc   :  { %171 = vperm.xlu0 %467, %v165_v10  }
   0xd   :  { %p477_p4 = pnand %p476_p3, %p470_p0 }
   0xe   :  { %186 = vperm.xlu1 %468, %v168_v13  }
  0x10   :  { %181 = vperm.xlu0 %467, %v167_v12  }
  0x14   :  { %295 = vperm.xlu0 %467, %v292_v14  }
  0x81   :  { %v49_v17 = vpop.permute.xlu1 %48 }
  0x83   :  { %v39_v16 = vpop.permute.xlu0 %38 }
  0x85   :  { %v54_v24 = vpop.permute.xlu1 %53 }
  0x87   :  { %v44_v18 = vpop.permute.xlu0 %43 }
  0x89   :  { %v177_v39 = vpop.permute.xlu1 %176 }
  0x8b   :  { %v172_v40 = vpop.permute.xlu0 %171 }
  0x8d   :  { %v187_v46 = vpop.permute.xlu1 %186 }
  0x8f   :  { %v182_v49 = vpop.permute.xlu0 %181 }
  0x93   :  { %v296_v58 = vpop.permute.xlu0 %295 }
  0xd9   :  { %v419_v19 = vpop.f32.mrb[0].mxu0 }
  0xda   :  { %v144_v20 = vadd.f32 %v419_v19, %v44_v18  ;;  %v138_v21 = vpop.f32.mrb[1].mxu0 }
  0xdb   :  { %v139_v22 = vadd.f32 %v138_v21, %v39_v16 }
  0xdc   :  { %v158_v23 = vmax.f32 %v144_v20, 0.0 }
  0xdd   :  { %v157_v25 = vmax.f32 %v139_v22, 0.0  ;;  %v422_v26 = vpop.f32.mrb[2].mxu0 }
  0xde   :  { %v154_v27 = vadd.f32 %v422_v26, %v54_v24  ;;  %v148_v28 = vpop.f32.mrb[3].mxu0 }
  0xdf   :  { %v149_v29 = vadd.f32 %v148_v28, %v49_v17  ;;  %v448_v30 = vpack.c.bf16 %v158_v23, %v157_v25 }
  0xe0   :  { %v160_v31 = vmax.f32 %v154_v27, 0.0 }
  0xe1   :  { %v159_v32 = vmax.f32 %v149_v29, 0.0  ;;  %449 = vmatprep.subr.bf16.mxu1 %v448_v30 }
  0xe2   :  { %451 = vmatpush3.bf16.msra.mxu1 %v448_v30 }
  0xe3   :  { %v452_v33 = vpack.c.bf16 %v160_v31, %v159_v32 }
  0xe5   :  { %453 = vmatprep.subr.bf16.mxu1 %v452_v33 }
  0xe6   :  { %455 = vmatpush3.bf16.msra.mxu1 %v452_v33 }
  0xe9   :  { %432 = vmatmul.mubr.msk.f32.vlgmr.msra.gmra.mrb[0].mxu1 %vm189_vm1, %v162_v34 }
  0xea   :  { %434 = vmatprep.mubr.msk.f32.mxu1 %vm189_vm1, %v163_v35 }
  0xed   :  { %435 = vmatmul.mubr.msk.f32.gmra.mrb[2].mxu1 %vm189_vm1, %v164_v36 }
 0x1bc   :  { %v433_v41 = vpop.f32.mrb[0].mxu1 }
 0x1bd   :  { %v274_v42 = vadd.f32 %v433_v41, %v177_v39  ;;  %v268_v43 = vpop.f32.mrb[1].mxu1 }
 0x1be   :  { %v269_v44 = vadd.f32 %v268_v43, %v172_v40 }
 0x1bf   :  { %v288_v45 = vmax.f32 %v274_v42, 0.0 }
 0x1c0   :  { %v287_v47 = vmax.f32 %v269_v44, 0.0  ;;  %v436_v48 = vpop.f32.mrb[2].mxu1 }
 0x1c1   :  { %v284_v50 = vadd.f32 %v436_v48, %v187_v46  ;;  %v278_v51 = vpop.f32.mrb[3].mxu1 }
 0x1c2   :  { %v457_v52 = vpack.c.bf16 %v288_v45, %v287_v47  ;;  %v279_v53 = vadd.f32 %v278_v51, %v182_v49 }
 0x1c3   :  { %v290_v54 = vmax.f32 %v284_v50, 0.0 }
 0x1c4   :  { %v289_v55 = vmax.f32 %v279_v53, 0.0  ;;  %458 = vmatpush3.bf16.msra.mxu0 %v457_v52 }
 0x1c5   :  { %459 = vmatprep.subr.bf16.mxu0 %v494_v37 }
 0x1c6   :  { %v460_v56 = vpack.c.bf16 %v290_v54, %v289_v55 }
 0x1c8   :  { %461 = vmatpush3.bf16.msra.mxu0 %v460_v56 }
 0x1cb   :  { %446 = vmatmul.mubr.msk.f32.vlgmr.msra.gmra.mrb[4].mxu0 %vm189_vm1, %v291_v57 }
 0x29e   :  { %v367_v59 = vpop.f32.mrb[4].mxu0 }
 0x29f   :  { %v368_v60 = vadd.f32 %v367_v59, %v296_v58  ;;  %v447_v61 = vpop.f32.mrb[5].mxu0 }
 0x2a1   :  { %372 = vst.msk [vmem:[#allocation2] sm:$0x1f] %vm371_vm3, %v368_v60 }
 0x2a2   :  { %480 = shalt.err (!%p477_p4)
}
 0x2a3   :  { %s481_s13 = scalar_lea.hbm %s625_s7, 128 }
 0x2a4   :  { %p482_p5 = scmp.ne.s32.totalorder %s625_s7, %s481_s13  ;;  %p485_p6 = scmp.lt.u32.totalorder %s481_s13, %s625_s7 }
 0x2a6   :  { %p487_p7 = pnand %p485_p6, %p482_p5 }
 0x2a8   :  { %490 = shalt.err (!%p487_p7)
}
 0x2a9   :  { %382 = dma.vmem_to_hbm [thread:$0]  %s380_s10, 128, %s625_s7, [#allocation3]  }
 0x2aa   :  { %491 = dma.done.wait [#allocation3], 128  }
 0x2ab   :  { %492 = vsyncadd [#allocation3], 4294967168 }
 0x2ac   :  { %386 = vsyncpa [#allocation3], 1 }

</bundles_post_ra>
